<compile_context>
chip_gen: v6e
topology: v6e:2x2x1
jax: 0.10.0
libtpu: 0.0.40
codegen_flags: <defaults>
</compile_context>

<pallas_src>
import functools
import math

import jax
import jax.numpy as jnp
from jax.experimental import pallas as pl
from jax.experimental.pallas import tpu as pltpu


def attn_head_kernel(x_ref, w_ref, b_ref, o_ref, *, head_dim, matmul_dtype):
    """One grid step = one block of Bt batch elements.

    x_ref: (3, Bt, S, E)   stacked [query | key | value] activations
    w_ref: (3, E, Hp)      stacked projection weights, head dim zero-padded to Hp
    b_ref: (3, 1, Hp)      stacked projection biases, zero-padded to Hp
    o_ref: (Bt, S, Hp)     lane-dense (Hp multiple of 128) output slab
    """
    _, Bt, S, E = x_ref.shape
    Hp = o_ref.shape[-1]

    x = x_ref[...].astype(matmul_dtype)               # (3, Bt, S, E)
    w = w_ref[...].astype(matmul_dtype)               # (3, E, Hp)
    b = b_ref[...]                                    # (3, 1, Hp) f32

    # Fused grouped QKV projection; batch block collapsed into the matmul M dim
    # so every weight push sees M = Bt*S rows.
    x2 = x.reshape(3, Bt * S, E)
    qkv = jnp.einsum("gme,geh->gmh", x2, w,
                     preferred_element_type=jnp.float32)           # (3, Bt*S, Hp)
    qkv = (qkv + b).reshape(3, Bt, S, Hp)             # bias add in f32 on the VPU

    # Selecting q/k/v along the leading group axis is free (no lane slicing).
    scale = 1.0 / math.sqrt(head_dim)                 # true head_dim, not Hp
    q = qkv[0] * scale                                # scale (S,Hp) q, not (S,S) scores
    k = qkv[1]
    v = qkv[2]

    # scores = (q/sqrt(d)) @ k^T — contraction over the last dim of both
    # operands, so no XLU transpose is emitted.  Padded lanes of q/k are zero
    # and contribute nothing.
    scores = jnp.einsum("bqh,bkh->bqk",
                        q.astype(matmul_dtype), k.astype(matmul_dtype),
                        preferred_element_type=jnp.float32)        # (Bt, S, S)

    # Numerically stable softmax over keys (f32 elementwise, EUP reciprocal).
    m = jnp.max(scores, axis=-1, keepdims=True)
    e = jnp.exp(scores - m)
    denom = jnp.sum(e, axis=-1, keepdims=True)
    weights = e * pl.reciprocal(denom, approx=True)   # EUP vrcp, VPU slot stays free

    out = jnp.einsum("bqk,bkh->bqh",
                     weights.astype(matmul_dtype), v.astype(matmul_dtype),
                     preferred_element_type=jnp.float32)           # (Bt, S, Hp)
    o_ref[...] = out.astype(o_ref.dtype)              # unmasked lane-dense store


def _vmem_capacity_bytes():
    try:
        info = pltpu.get_tpu_info()
        return int(getattr(info, "vmem_capacity_bytes", 64 * 1024 * 1024))
    except Exception:
        return 64 * 1024 * 1024   # conservative fallback (v7x per-core VMEM)


def _pick_block_b(B, S, E, Hp, vmem_bytes):
    """Largest divisor of B whose per-step footprint fits the VMEM budget,
    capped at B//2 so the parallel batch axis has >= 2 steps (v7x: 2 TCs)."""
    f32, bf16 = 4, 2

    def footprint(bt):
        io = 2 * (3 * bt * S * E + bt * S * Hp) * f32            # double-buffered x / out
        wgt = 2 * (3 * E * Hp + 3 * Hp) * f32                    # double-buffered w / b
        live_f32 = (3 * bt * S * Hp + 2 * bt * S * S + bt * S * Hp) * f32
        live_lp = (3 * bt * S * E + 3 * E * Hp + 3 * bt * S * Hp
                   + 2 * bt * S * S) * bf16                      # low-precision copies
        return io + wgt + live_f32 + live_lp

    budget = int(0.6 * vmem_bytes)
    bt = max(1, B // 2) if B >= 2 else 1
    while bt > 1 and (B % bt != 0 or footprint(bt) > budget):
        bt -= 1
    return bt


def attention_head(query, key, value, wq, wk, wv, bq, bk, bv, *,
                   matmul_dtype=jnp.bfloat16):
    """query/key/value: [B, S, E]; w*: [E, H]; b*: [H]. Returns [B, S, H]."""
    B, S, E = query.shape
    H = wq.shape[1]
    Hp = pl.cdiv(H, 128) * 128            # lane-dense head dim

    # ---- wrapper-side layout plumbing (would be precomputed at init time) ----
    # Grouped weights/biases, zero-padded so the attn@V matmul N dim and the
    # stored output slab are 128-lane dense.
    w = jnp.stack([wq, wk, wv], axis=0)                     # (3, E, H)
    b = jnp.stack([bq, bk, bv], axis=0)                     # (3, H)
    if Hp != H:
        w = jnp.pad(w, ((0, 0), (0, 0), (0, Hp - H)))
        b = jnp.pad(b, ((0, 0), (0, Hp - H)))
    b = b.reshape(3, 1, Hp)

    # Stacked activations keep cross-attention semantics (query/key/value may
    # differ) without a zero-padded block-diagonal weight.
    x = jnp.stack([query, key, value], axis=0)              # (3, B, S, E)

    vmem_bytes = _vmem_capacity_bytes()
    Bt = _pick_block_b(B, S, E, Hp, vmem_bytes)
    grid = (B // Bt,)

    kernel = functools.partial(attn_head_kernel, head_dim=H,
                               matmul_dtype=matmul_dtype)

    flops = 2 * 3 * B * S * E * Hp + 2 * 2 * B * S * S * Hp
    bytes_accessed = (x.size + w.size + b.size + B * S * Hp) * 4
    cost = pl.CostEstimate(flops=int(flops),
                           transcendentals=int(B * S * S),
                           bytes_accessed=int(bytes_accessed))

    out_padded = pl.pallas_call(
        kernel,
        out_shape=jax.ShapeDtypeStruct((B, S, Hp), query.dtype),
        grid_spec=pltpu.PrefetchScalarGridSpec(
            num_scalar_prefetch=0,
            grid=grid,
            in_specs=[
                pl.BlockSpec((3, Bt, S, E), lambda i: (0, i, 0, 0)),
                pl.BlockSpec((3, E, Hp), lambda i: (0, 0, 0)),
                pl.BlockSpec((3, 1, Hp), lambda i: (0, 0, 0)),
            ],
            out_specs=pl.BlockSpec((Bt, S, Hp), lambda i: (i, 0, 0)),
        ),
        compiler_params=pltpu.CompilerParams(
            dimension_semantics=("parallel",),
            vmem_limit_bytes=min(int(0.85 * vmem_bytes), 100 * 1024 * 1024),
        ),
        cost_estimate=cost,
    )(x, w, b)

    # Drop the zero-padded head lanes (pure layout plumbing).
    return out_padded[:, :, :H]


def _reference(query, key, value, wq, wk, wv, bq, bk, bv):
    q = query @ wq + bq
    k = key @ wk + bk
    v = value @ wv + bv
    scores = jnp.einsum("bqd,bkd->bqk", q, k) / math.sqrt(q.shape[-1])
    w = jax.nn.softmax(scores, axis=-1)
    return jnp.einsum("bqk,bkd->bqd", w, v)


if __name__ == "__main__":
    B, S, E, H = 2, 8, 32, 16  # batch, seq, embed_dim, head_dim

    key0 = jax.random.PRNGKey(0)
    ks = jax.random.split(key0, 9)

    query = jax.random.normal(ks[0], (B, S, E), dtype=jnp.float32)
    key_in = jax.random.normal(ks[1], (B, S, E), dtype=jnp.float32)
    value = jax.random.normal(ks[2], (B, S, E), dtype=jnp.float32)

    # Deterministic parameter init (PyTorch Linear-style uniform bound 1/sqrt(in)).
    bound = 1.0 / math.sqrt(E)
    wq = jax.random.uniform(ks[3], (E, H), jnp.float32, -bound, bound)
    wk = jax.random.uniform(ks[4], (E, H), jnp.float32, -bound, bound)
    wv = jax.random.uniform(ks[5], (E, H), jnp.float32, -bound, bound)
    bq = jax.random.uniform(ks[6], (H,), jnp.float32, -bound, bound)
    bk = jax.random.uniform(ks[7], (H,), jnp.float32, -bound, bound)
    bv = jax.random.uniform(ks[8], (H,), jnp.float32, -bound, bound)

    out = attention_head(query, key_in, value, wq, wk, wv, bq, bk, bv)
    out = jax.block_until_ready(out)

    ref = _reference(query, key_in, value, wq, wk, wv, bq, bk, bv)
    assert out.shape == (B, S, H)
    # Tolerance accounts for bf16 MXU operands (f32 accumulation) and the
    # approximate EUP reciprocal in the softmax denominator.
    err = float(jnp.max(jnp.abs(out - ref)))
    assert jnp.allclose(out, ref, atol=2e-2, rtol=2e-2), err

    print("KERNEL_OK")
</pallas_src>

<mosaic_0001>
module attributes {stable_mosaic.version = 11 : i64} {
  func.func @attn_head_kernel(%arg0: i32, %arg1: memref<3x1x8x32xf32, #tpu.memory_space<vmem>>, %arg2: memref<3x32x128xf32, #tpu.memory_space<vmem>>, %arg3: memref<3x1x128xf32, #tpu.memory_space<vmem>>, %arg4: memref<1x8x128xf32, #tpu.memory_space<vmem>>) attributes {dimension_semantics = [#tpu.dimension_semantics<parallel>], iteration_bounds = array<i64: 2>, scalar_prefetch = 0 : i64, scratch_operands = 0 : i64, tpu.core_type = #tpu.core_type<tc>, window_params = [{transform_indices = @transform_0, window_bounds = array<i64: 3, 1, 8, 32>}, {pipeline_mode = #tpu.pipeline_mode<synchronous>, transform_indices = @transform_1, window_bounds = array<i64: 3, 32, 128>}, {pipeline_mode = #tpu.pipeline_mode<synchronous>, transform_indices = @transform_2, window_bounds = array<i64: 3, 1, 128>}, {transform_indices = @transform_3, window_bounds = array<i64: 1, 8, 128>}]} {
    %c0 = arith.constant 0 : index
    %c0_0 = arith.constant 0 : index
    %c0_1 = arith.constant 0 : index
    %c0_2 = arith.constant 0 : index
    %0 = vector.load %arg1[%c0, %c0_0, %c0_1, %c0_2] : memref<3x1x8x32xf32, #tpu.memory_space<vmem>>, vector<3x1x8x32xf32>
    %1 = arith.truncf %0 : vector<3x1x8x32xf32> to vector<3x1x8x32xbf16>
    %c0_3 = arith.constant 0 : index
    %c0_4 = arith.constant 0 : index
    %c0_5 = arith.constant 0 : index
    %2 = vector.load %arg2[%c0_3, %c0_4, %c0_5] : memref<3x32x128xf32, #tpu.memory_space<vmem>>, vector<3x32x128xf32>
    %3 = arith.truncf %2 : vector<3x32x128xf32> to vector<3x32x128xbf16>
    %c0_6 = arith.constant 0 : index
    %c0_7 = arith.constant 0 : index
    %c0_8 = arith.constant 0 : index
    %4 = vector.load %arg3[%c0_6, %c0_7, %c0_8] : memref<3x1x128xf32, #tpu.memory_space<vmem>>, vector<3x1x128xf32>
    %5 = vector.shape_cast %1 : vector<3x1x8x32xbf16> to vector<3x8x32xbf16>
    "tpu.trace_start"() <{level = 10 : i32, message = "gme,geh->gmh"}> : () -> ()
    %cst = arith.constant dense<0.000000e+00> : vector<3x8x128xf32>
    %6 = tpu.matmul %5, %3, %cst {dimension_numbers = #tpu.dot_dimension_numbers<[2], [1], [1], [2], [0, 0, 0, 1, 1, 2], [0], [0]>} : vector<3x8x32xbf16>, vector<3x32x128xbf16>, vector<3x8x128xf32> -> vector<3x8x128xf32>
    "tpu.trace_stop"() : () -> ()
    %7 = vector.broadcast %4 : vector<3x1x128xf32> to vector<3x8x128xf32>
    %8 = arith.addf %6, %7 : vector<3x8x128xf32>
    %9 = vector.shape_cast %8 : vector<3x8x128xf32> to vector<3x1x8x128xf32>
    %10 = vector.extract_strided_slice %9 {offsets = [0, 0, 0, 0], sizes = [1, 1, 8, 128], strides = [1, 1, 1, 1]} : vector<3x1x8x128xf32> to vector<1x1x8x128xf32>
    %11 = vector.shape_cast %10 : vector<1x1x8x128xf32> to vector<1x8x128xf32>
    %cst_9 = arith.constant 2.500000e-01 : f32
    %12 = vector.broadcast %cst_9 : f32 to vector<1x8x128xf32>
    %13 = arith.mulf %11, %12 : vector<1x8x128xf32>
    %14 = vector.extract_strided_slice %9 {offsets = [1, 0, 0, 0], sizes = [1, 1, 8, 128], strides = [1, 1, 1, 1]} : vector<3x1x8x128xf32> to vector<1x1x8x128xf32>
    %15 = vector.shape_cast %14 : vector<1x1x8x128xf32> to vector<1x8x128xf32>
    %16 = vector.extract_strided_slice %9 {offsets = [2, 0, 0, 0], sizes = [1, 1, 8, 128], strides = [1, 1, 1, 1]} : vector<3x1x8x128xf32> to vector<1x1x8x128xf32>
    %17 = vector.shape_cast %16 : vector<1x1x8x128xf32> to vector<1x8x128xf32>
    %18 = arith.truncf %13 : vector<1x8x128xf32> to vector<1x8x128xbf16>
    %19 = arith.truncf %15 : vector<1x8x128xf32> to vector<1x8x128xbf16>
    "tpu.trace_start"() <{level = 10 : i32, message = "bqh,bkh->bqk"}> : () -> ()
    %cst_10 = arith.constant dense<0.000000e+00> : vector<1x8x8xf32>
    %20 = tpu.matmul %18, %19, %cst_10 {dimension_numbers = #tpu.dot_dimension_numbers<[2], [2], [1], [1], [0, 0, 0, 1, 1, 1], [0], [0]>} : vector<1x8x128xbf16>, vector<1x8x128xbf16>, vector<1x8x8xf32> -> vector<1x8x8xf32>
    "tpu.trace_stop"() : () -> ()
    %cst_11 = arith.constant dense<0xFF800000> : vector<1x8xf32>
    %21 = vector.multi_reduction <maximumf>, %20, %cst_11 [2] : vector<1x8x8xf32> to vector<1x8xf32>
    %22 = vector.shape_cast %21 : vector<1x8xf32> to vector<1x8x1xf32>
    %23 = vector.broadcast %22 : vector<1x8x1xf32> to vector<1x8x8xf32>
    %24 = arith.subf %20, %23 : vector<1x8x8xf32>
    %25 = math.exp %24 : vector<1x8x8xf32>
    %cst_12 = arith.constant dense<0.000000e+00> : vector<1x8xf32>
    %26 = vector.multi_reduction <add>, %25, %cst_12 [2] : vector<1x8x8xf32> to vector<1x8xf32>
    %27 = vector.shape_cast %26 : vector<1x8xf32> to vector<1x8x1xf32>
    %28 = tpu.reciprocal %27 {approx = true} : vector<1x8x1xf32> -> vector<1x8x1xf32>
    %29 = vector.broadcast %28 : vector<1x8x1xf32> to vector<1x8x8xf32>
    %30 = arith.mulf %25, %29 : vector<1x8x8xf32>
    %31 = arith.truncf %30 : vector<1x8x8xf32> to vector<1x8x8xbf16>
    %32 = arith.truncf %17 : vector<1x8x128xf32> to vector<1x8x128xbf16>
    "tpu.trace_start"() <{level = 10 : i32, message = "bqk,bkh->bqh"}> : () -> ()
    %cst_13 = arith.constant dense<0.000000e+00> : vector<1x8x128xf32>
    %33 = tpu.matmul %31, %32, %cst_13 {dimension_numbers = #tpu.dot_dimension_numbers<[2], [1], [1], [2], [0, 0, 0, 1, 1, 2], [0], [0]>} : vector<1x8x8xbf16>, vector<1x8x128xbf16>, vector<1x8x128xf32> -> vector<1x8x128xf32>
    "tpu.trace_stop"() : () -> ()
    %c0_14 = arith.constant 0 : index
    %c0_15 = arith.constant 0 : index
    %c0_16 = arith.constant 0 : index
    %34 = vector.load %arg4[%c0_14, %c0_15, %c0_16] : memref<1x8x128xf32, #tpu.memory_space<vmem>>, vector<1x8x128xf32>
    tpu.vector_store %arg4[%c0_14, %c0_15, %c0_16], %33 {strides = array<i32>} : memref<1x8x128xf32, #tpu.memory_space<vmem>>, vector<1x8x128xf32>,
    return
  }
  func.func @transform_0(%arg0: i32) -> (i32, i32, i32, i32) {
    %c0_i32 = arith.constant 0 : i32
    %c0_i32_0 = arith.constant 0 : i32
    %c0_i32_1 = arith.constant 0 : i32
    %c0_i32_2 = arith.constant 0 : i32
    return %c0_i32, %arg0, %c0_i32_0, %c0_i32_1 : i32, i32, i32, i32
  }
  func.func @transform_1(%arg0: i32) -> (i32, i32, i32) {
    %c0_i32 = arith.constant 0 : i32
    %c0_i32_0 = arith.constant 0 : i32
    %c0_i32_1 = arith.constant 0 : i32
    %c0_i32_2 = arith.constant 0 : i32
    return %c0_i32, %c0_i32_0, %c0_i32_1 : i32, i32, i32
  }
  func.func @transform_2(%arg0: i32) -> (i32, i32, i32) {
    %c0_i32 = arith.constant 0 : i32
    %c0_i32_0 = arith.constant 0 : i32
    %c0_i32_1 = arith.constant 0 : i32
    %c0_i32_2 = arith.constant 0 : i32
    return %c0_i32, %c0_i32_0, %c0_i32_1 : i32, i32, i32
  }
  func.func @transform_3(%arg0: i32) -> (i32, i32, i32) {
    %c0_i32 = arith.constant 0 : i32
    %c0_i32_0 = arith.constant 0 : i32
    %c0_i32_1 = arith.constant 0 : i32
    return %arg0, %c0_i32, %c0_i32_0 : i32, i32, i32
  }
}

</mosaic_0001>

<bundles_post_ra>
// kernel: tpu_custom_call.1
= control target key start
LH: loop header
LB: loop body
LE: loop exit
PB: predicated region body
PF: predicated region fallthrough
CT: control target
= control target key end

     0   :  { %8 = vsyncpa [#allocation3], 0  ;;  %s1091_s0 = inlined_call_operand.hbm [shape: f32[3,2,8,32], index: 0, kind: input, shape index: {}]   ;;  %s1092_s1 = inlined_call_operand.hbm [shape: f32[3,32,128], index: 1, kind: input, shape index: {}]   ;;  %s1093_s2 = inlined_call_operand.vmem [shape: f32[3,1,128], index: 2, kind: input, shape index: {}]   ;;  %s1094_s3 = inlined_call_operand.hbm [shape: f32[2,8,128], index: 3, kind: output, shape index: {}]  }
   0x1   :  { %10 = vsyncpa [#allocation3 + $0x1], 0 }
   0x2   :  { %11 = vsyncpa [#allocation6], 0 }
   0x3   :  { %12 = vsyncpa [#allocation4], 0 }
   0x4   :  { %14 = vsyncpa [#allocation4 + $0x1], 0  ;;  %s866_s12 = smov 0   ;;  %s868_s13 = smov 0  }
   0x5   :  { %s870_s14 = smov 0   ;;  %s872_s15 = smov 0  }
   0x6 LB: > { %s887_s16 = sadd.s32 4294967295, %s836_s15   ;;  %s578_s17 = sadd.s32 4294967294, %s836_s15   ;;  %s836_s15 = sphi %s872_s15, %s1116_s15   ;;  %s832_s14 = sphi %s870_s14, %s1115_s14   ;;  %s828_s13 = sphi %s868_s13, %s1114_s13   ;;  %s824_s12 = sphi %s866_s12, %s1113_s12  }
   0x7   : > { %s891_s18 = sadd.s32 1, %s836_s15   ;;  %s27_s19 = sadd.s32 1, %s832_s14 }
   0x8   : > { %s24_s20 = ssub.s32 %s836_s15, %s891_s18  ;;  %p34_p0 = scmp.ne.s32.totalorder %s832_s14, %s828_s13 }
   0x9   : > { %p25_p1 = scmp.eq.s32.totalorder %s24_s20, 0  ;;  %p35_p2 = scmp.eq.s32.totalorder %s836_s15, 0 }
   0xa   : > { %p40_p3 = scmp.ne.s32.totalorder %s828_s13, %s824_s12  ;;  %p1098_p4 = scmp.eq.s32.totalorder %s887_s16, 0 }
   0xb   : > { %s903_s21 = scalar_select %p25_p1, %s832_s14, %s27_s19  }
   0xc   : > { %p905_p5 = por %p35_p2, %p34_p0  ;;  %p911_p6 = por %p1098_p4, %p40_p3 }
   0xd   : > { %p106_p7 = scmp.eq.s32.totalorder %s887_s16, 1  ;;  %p112_p8 = scmp.eq.s32.totalorder %s578_s17, 1 }
   0xe   : > { %s1100_s23 = scalar_select %p911_p6, 1, 0 }
   0xf   : > { %p579_p9 = scmp.ge.s32.totalorder %s836_s15, 1  ;;  %p119_p10 = scmp.lt.s32.totalorder %s836_s15, 3 }
  0x10   : > { %p918_p11 = por %p106_p7, %p34_p0  ;;  %p922_p12 = por %p112_p8, %p40_p3 }
  0x11   : > { %p926_p13 = pnand %p579_p9, %p119_p10  ;;  %s838_s27 = smov [#allocation5]  }
  0x12   : > { %s1101_s24 = scalar_select %p918_p11, 1, 0 }
  0x13   : > { %s1102_s25 = scalar_select %p922_p12, 1, 0 }
  0x14   : > { %s1103_s26 = scalar_select %p926_p13, 1, 0 }
  0x15   : > { %p656_p1 = pneg %p926_p13  ;;  %s131_s28 = sshll.u32 %s838_s27, 4  ;;  %s132_s28 = int_to_ptr.vmem [resolvable:$true] %s131_s28 }
  0x16   : > { %p669_p3 = scmp.lt.s32.totalorder %s836_s15, 2  ;;  %s148_s30 = sand.u32 1, %s832_s14  }
  0x17   : > { %p934_p2 = pnand %p656_p1, %p1098_p4  ;;  %s725_s4 = scalar_lea.vmem %s132_s28, 1536 }
  0x18   : > { %p726_p8 = scmp.ne.s32.totalorder %s132_s28, %s725_s4  ;;  %p733_p12 = scmp.lt.s32.totalorder %s132_s28, %s132_s28 }
  0x19   : > { %p716_p7 = pneg %p934_p2  ;;  %p734_p11 = scmp.lt.s32.totalorder %s725_s4, %s725_s4 }
  0x1b   : > { %p728_p9 = pnand %p726_p8, %p716_p7  ;;  %p735_p6 = por %p734_p11, %p733_p12 }
  0x1d   : > { %p729_p10 = pneg %p728_p9 }
  0x1f   : > { %p736_p13 = pnand %p735_p6, %p729_p10 }
  0x21   : > { %739 = shalt.err (!%p736_p13)
}
  0x22   : > { %s839_s5 = smov 128   ;;  %s840_s6 = smov 8  }
  0x23   : > { %659 = dma.hbm_to_vmem [thread:$0]  (!%p934_p2), %s1092_s1, 1536, %s132_s28, [#allocation6], %s839_s5, %s839_s5, %s840_s6  }
  0x24   : > { %p955_p1 = pnand %p669_p3, %p905_p5  ;;  %s646_s10 = smul.u32 24, %s148_s30 }
  0x25   : > { %s582_s11 = sshll.u32 %s836_s15, 7  ;;  %s967_s22 = scalar_lea.sflag [#allocation3], %s148_s30 }
  0x26   : > { %s963_s20 = scalar_lea.hbm %s1091_s0, %s582_s11  ;;  %s152_s27 = scalar_lea.vmem [#allocation2], %s646_s10 }
  0x27   : > { %s158_s29 = sshll.u32 %s152_s27, 4  ;;  %s740_s28 = scalar_lea.hbm %s963_s20, 384  ;;  %s965_s29 = int_to_ptr.vmem [resolvable:$true] %s158_s29 }
  0x28   : > { %p741_p5 = scmp.ne.s32.totalorder %s963_s20, %s740_s28  ;;  %p742_p6 = pneg %p955_p1 }
  0x29   : > { %s745_s8 = scalar_lea.hbm %s1091_s0, 768  ;;  %p746_p13 = scmp.lt.s32.totalorder %s963_s20, %s1091_s0 }
  0x2a   : > { %p743_p11 = pnand %p742_p6, %p741_p5  ;;  %p747_p2 = scmp.lt.s32.totalorder %s745_s8, %s740_s28 }
  0x2c   : > { %p744_p12 = pneg %p743_p11  ;;  %p748_p3 = por %p747_p2, %p746_p13 }
  0x2e   : > { %p749_p7 = pnand %p748_p3, %p744_p12 }
  0x30   : > { %752 = shalt.err (!%p749_p7)
}
  0x31   : > { %s753_s30 = scalar_lea.vmem %s965_s29, 384  ;;  %s841_s10 = smov [#allocation2]  }
  0x32   : > { %p754_p8 = scmp.ne.s32.totalorder %s965_s29, %s753_s30  ;;  %s758_s19 = sshll.u32 %s841_s10, 4  ;;  %s759_s19 = int_to_ptr.vmem [resolvable:$false] %s758_s19 }
  0x33   : > { %s760_s27 = scalar_lea.vmem %s759_s19, 768  ;;  %p761_p5 = scmp.lt.s32.totalorder %s965_s29, %s759_s19 }
  0x34   : > { %p756_p9 = pnand %p754_p8, %p742_p6  ;;  %p762_p11 = scmp.lt.s32.totalorder %s760_s27, %s753_s30 }
  0x36   : > { %p757_p10 = pneg %p756_p9  ;;  %p763_p0 = por %p762_p11, %p761_p5 }
  0x38   : > { %p764_p4 = pnand %p763_p0, %p757_p10 }
  0x3a   : > { %767 = shalt.err (!%p764_p4)
}
  0x3b   : > { %s842_s28 = smov 256   ;;  %p1106_p6 = scmp.ne.s32.totalorder %s1103_s26, 0 }
  0x3c   : > { %663 = dma.hbm_to_vmem [thread:$0]  (!%p955_p1), %s963_s20, 384, %s965_s29, %s967_s22, %s842_s28, %s839_s5, %s840_s6  }
  0x3d   : > { %170 = sbr.rel (%p1106_p6) target bundleno = 1001 (0x3e9), region = 32  ;;  %s993_s4 = sand.u32 (!%p1106_p6), 1, %s828_s13  }
  0x3e   : > { %s647_s7 = smul.u32 (!%p1106_p6), 24, %s993_s4  ;;  %s173_s8 = scalar_lea.sflag (!%p1106_p6), [#allocation3], %s993_s4 }
  0x3f   : > { %p1107_p4 = scmp.ne.s32.totalorder (!%p1106_p6), %s1100_s23, 0 }
  0x40   : > { %s997_s11 = scalar_lea.vmem (!%p1106_p6), [#allocation2], %s647_s7 }
  0x42   : > { %811 = dma.done.wait (%p1107_p4), %s173_s8, 384  }
  0x43   : > { %813 = vsyncadd (%p1107_p4), %s173_s8, 4294966912  ;;  %p1108_p0 = scmp.eq.s32.totalorder %s887_s16, 0 }
  0x45   : > { %815 = dma.done.wait (%p1108_p0), [#allocation6], 1536   ;;  %p1109_p1 = pmov %p1108_p0 }
  0x46   : > { %v843_v0 = vmov 0.0   ;;  %vm844_vm0 = vmmov 0   ;;  %v212_v1 = vld [vmem:[#allocation5 + $0x10] sm:$0xff]  ;;  %v213_v2 = vld [vmem:[#allocation5 + $0x18] sm:$0xff]  ;;  %v210_v6 = vld [vmem:[#allocation5] sm:$0xff]  ;;  %vm249_vm1 = vcmask 261120  }
  0x47   : > { %817 = vsyncadd (%p1109_p1), [#allocation6], 4294965760  ;;  %610 = vmatprep.subr.bf16.mxu0 %v843_v0  ;;  %618 = vmatprep.subr.bf16.mxu1 %v843_v0  ;;  %v216_v3 = vld [vmem:[#allocation5 + $0x30] sm:$0xff]  ;;  %v223_v4 = vpack.c.bf16 %v213_v2, %v212_v1  ;;  %v217_v5 = vld [vmem:[#allocation5 + $0x38] sm:$0xff]  ;;  %vm422_vm2 = vcmask 64512   ;;  %vm439_vm3 = vcmask 1043456  }
  0x48   : > { %614 = vmatprep.mubr.msk.bf16.mxu0 %vm844_vm0, %v843_v0  ;;  %622 = vmatprep.mubr.msk.bf16.mxu1 %vm844_vm0, %v843_v0  ;;  %v211_v7 = vld [vmem:[#allocation5 + $0x8] sm:$0xff]  ;;  %v225_v8 = vpack.c.bf16 %v217_v5, %v216_v3  ;;  %v214_v9 = vld [vmem:[#allocation5 + $0x20] sm:$0xff]  ;;  %v205_v14 = vld [vmem:[%s997_s11 + $0x8] sm:$0xff]  ;;  %s585_s29 = sshll.u32 %s993_s4, 3  ;;  %s594_s30 = sshll.u32 %s887_s16, 7 }
  0x49   : > { %v215_v10 = vld [vmem:[#allocation5 + $0x28] sm:$0xff]  ;;  %611 = vmatpush3.bf16.msra.mxu0 %v223_v4  ;;  %v222_v11 = vpack.c.bf16 %v211_v7, %v210_v6  ;;  %v208_v16 = vpack.c.bf16 %v205_v14, %v205_v14  ;;  %v586_v17 = vld [vmem:[%s1093_s2] ss:$0 sm:$0xff]  ;;  %v587_v18 = vld [vmem:[%s1093_s2 + $0x1] ss:$0 sm:$0xff]  ;;  %s202_s22 = scalar_lea.vmem [#allocation7], %s585_s29  ;;  %s1050_s27 = scalar_lea.hbm %s1094_s3, %s594_s30 }
  0x4a   : > { %v204_v12 = vld [vmem:[%s997_s11] sm:$0xff]  ;;  %619 = vmatpush3.bf16.msra.mxu1 %v225_v8  ;;  %612 = vmatprep.subr.bf16.mxu0 %v843_v0  ;;  %v224_v13 = vpack.c.bf16 %v215_v10, %v214_v9  ;;  %v221_v33 = vld [vmem:[#allocation5 + $0x58] sm:$0xff]  ;;  %v218_v34 = vld [vmem:[#allocation5 + $0x40] sm:$0xff]  ;;  %s498_s17 = sshll.u32 %s202_s22, 4  ;;  %s485_s28 = scalar_lea.sflag [#allocation4], %s993_s4  ;;  %s1045_s17 = int_to_ptr.vmem [resolvable:$true] %s498_s17 }
  0x4b   : > { %620 = vmatprep.subr.bf16.mxu1 %v843_v0  ;;  %v207_v15 = vpack.c.bf16 %v204_v12, %v204_v12  ;;  %v220_v32 = vld [vmem:[#allocation5 + $0x50] sm:$0xff]  ;;  %v219_v36 = vld [vmem:[#allocation5 + $0x48] sm:$0xff]  ;;  %v206_v38 = vld [vmem:[%s997_s11 + $0x10] sm:$0xff]  ;;  %s768_s7 = scalar_lea.vmem %s1045_s17, 128  ;;  %p1110_p13 = scmp.ne.s32.totalorder %s1101_s24, 0 }
  0x4c   : > { %v227_v35 = vpack.c.bf16 %v221_v33, %v220_v32  ;;  %v226_v37 = vpack.c.bf16 %v219_v36, %v218_v34  ;;  %v209_v39 = vpack.c.bf16 %v206_v38, %v206_v38  ;;  %v588_v50 = vld [vmem:[%s1093_s2 + $0x2] ss:$0 sm:$0xff]  ;;  %p769_p12 = scmp.ne.s32.totalorder %s1045_s17, %s768_s7  ;;  %s845_s16 = smov [#allocation7]  }
  0x4d   : > { %613 = vmatpush3.bf16.msra.mxu0 %v222_v11  ;;  %s772_s8 = sshll.u32 %s845_s16, 4  ;;  %s773_s8 = int_to_ptr.vmem [resolvable:$false] %s772_s8 }
  0x4e   : > { %621 = vmatpush3.bf16.msra.mxu1 %v224_v13  ;;  %626 = vmatprep.subr.bf16.mxu0 %v843_v0  ;;  %p770_p2 = pnand %p769_p12, %p1110_p13  ;;  %s774_s11 = scalar_lea.vmem %s773_s8, 256 }
  0x4f   : > { %634 = vmatprep.subr.bf16.mxu1 %v843_v0  ;;  %p775_p7 = scmp.lt.s32.totalorder %s1045_s17, %s773_s8  ;;  %p776_p8 = scmp.lt.s32.totalorder %s774_s11, %s768_s7 }
  0x50   : > { %615 = vmatmul.mubr.msk.bf16.vlgmr.msra.gmra.mxu0 %vm249_vm1, %v207_v15  ;;  %p771_p3 = pneg %p770_p2 }
  0x51   : > { %623 = vmatmul.mubr.msk.bf16.vlgmr.msra.gmra.mxu1 %vm249_vm1, %v208_v16  ;;  %630 = vmatprep.mubr.msk.bf16.mxu0 %vm844_vm0, %v843_v0  ;;  %p777_p9 = por %p776_p8, %p775_p7 }
  0x52   : > { %636 = vmatprep.mubr.msk.bf16.mxu1 %vm844_vm0, %v843_v0  ;;  %627 = vmatpush3.bf16.msra.mxu0 %v227_v35 }
  0x53   : > { %628 = vmatprep.subr.bf16.mxu0 %v843_v0  ;;  %p778_p10 = pnand %p777_p9, %p771_p3 }
  0x56   : > { %629 = vmatpush3.bf16.msra.mxu0 %v226_v37 }
  0x57   : > { %640 = vmatprep.subr.bf16.mxu0 %v843_v0 }
  0x59   : > { %631 = vmatmul.mubr.msk.bf16.vlgmr.msra.gmra.mxu0 %vm249_vm1, %v209_v39 }
  0x5a   : > { %642 = vmatprep.mubr.msk.bf16.mxu0 %vm844_vm0, %v843_v0 }
 0x110   : > { %v287_v19 = vpop.f32.mrf.mxu0 }
 0x111   : > { %v288_v20 = vadd.f32 %v586_v17, %v287_v19  ;;  %v330_v21 = vpop.f32.mrf.mxu1 }
 0x112   : > { %v331_v22 = vadd.f32 %v587_v18, %v330_v21  ;;  %v616_v23 = vpop.f32.mrf.mxu0 }
 0x113   : > { %v624_v24 = vpop.f32.mrf.mxu1  ;;  %v379_v27 = vmul.f32 0.25, %v288_v20 }
 0x114   : > { %v381_v25 = vpack.c.bf16 %v331_v22, %v331_v22  ;;  %v290_v26 = vpop.f32.mrf.mxu0 }
 0x115   : > { %v333_v28 = vpop.f32.mrf.mxu1  ;;  %v380_v31 = vpack.c.bf16 %v379_v27, %v379_v27 }
 0x116   : > { %635 = vmatpush3.bf16.xpose.msra.mxu1 %v381_v25  ;;  %v617_v29 = vpop.f32.mrf.mxu0 }
 0x117   : > { %v625_v30 = vpop.f32.mrf.mxu1 }
 0x119   : > { %v373_v51 = vpop.f32.mrf.mxu0 }
 0x11a   : > { %v374_v52 = vadd.f32 %v588_v50, %v373_v51 }
 0x11b   : > { %v632_v53 = vpop.f32.mrf.mxu0 }
 0x11c   : > { %v435_v54 = vpack.c.bf16 %v374_v52, %v374_v52 }
 0x11d   : > { %637 = vmatmul.mubr.bf16.vlgmr.msra.gmra.mxu1 %v380_v31  ;;  %v376_v55 = vpop.f32.mrf.mxu0 }
 0x11e   : > { %v441_v56 = vsel %vm439_vm3, %v435_v54, 0 }
 0x11f   : > { %v633_v57 = vpop.f32.mrf.mxu0  ;;  %641 = vmatpush3.bf16.msra.mxu0 %v441_v56 }
 0x1dd   : > { %v416_v40 = vpop.f32.mrf.mxu1 }
 0x1de   : > { %v423_v41 = vsel %vm422_vm2, %v416_v40, -inf }
 0x1df   : > { %424 = vmax.xlane.f32.xlu0 %v423_v41  ;;  %v638_v42 = vpop.f32.mrf.mxu1 }
 0x1e1   : > { %v419_v43 = vpop.f32.mrf.mxu1 }
 0x1e3   : > { %v639_v44 = vpop.f32.mrf.mxu1 }
 0x268   : > { %v425_v45 = vpop.xlane.xlu0 %424 }
 0x269   : > { %v426_v46 = vsub.f32 %v416_v40, %v425_v45 }
 0x26b   : > { %v427_v47 = vmul.f32 1.442695, %v426_v46 }
 0x26d   : > { %710 = vpow2.f32 %v427_v47 }
 0x27a   : > { %v711_v48 = vpop.eup %710 }
 0x27b   : > { %v429_v49 = vsel %vm422_vm2, %v711_v48, 0.0 }
 0x27c   : > { %430 = vadd.xlane.f32.xlu0 %v429_v49 }
 0x305   : > { %v431_v58 = vpop.xlane.xlu0 %430 }
 0x306   : > { %712 = vrcp.f32 %v431_v58 }
 0x313   : > { %v713_v59 = vpop.eup %712 }
 0x314   : > { %v433_v60 = vmul.f32 %v713_v59, %v711_v48 }
 0x316   : > { %v434_v61 = vpack.c.bf16 %v433_v60, %v433_v60 }
 0x318   : > { %643 = vmatmul.mubr.msk.bf16.vlgmr.msra.gmra.mxu0 %vm422_vm2, %v434_v61 }
 0x3d8   : > { %v477_v62 = vpop.f32.mrf.mxu0 }
 0x3d9   : > { %483 = vst [vmem:[%s202_s22] sm:$0xff] %v477_v62 }
 0x3da   : > { %v644_v63 = vpop.f32.mrf.mxu0 }
 0x3db   : > { %781 = shalt.err (!%p778_p10)
}
 0x3dc   : > { %s782_s23 = scalar_lea.hbm %s1050_s27, 128  ;;  %s786_s5 = scalar_lea.hbm %s1094_s3, 256 }
 0x3dd   : > { %p783_p5 = scmp.ne.s32.totalorder %s1050_s27, %s782_s23  ;;  %p787_p4 = scmp.lt.s32.totalorder %s1050_s27, %s1094_s3 }
 0x3de   : > { %p788_p0 = scmp.lt.s32.totalorder %s786_s5, %s782_s23 }
 0x3df   : > { %p784_p11 = pnand %p783_p5, %p1110_p13 }
 0x3e0   : > { %p789_p1 = por %p788_p0, %p787_p4 }
 0x3e1   : > { %p785_p6 = pneg %p784_p11 }
 0x3e3   : > { %p790_p12 = pnand %p789_p1, %p785_p6 }
 0x3e5   : > { %793 = shalt.err (!%p790_p12)
}
 0x3e6   : > { %654 = dma.vmem_to_hbm [thread:$0]  (%p1110_p13), %s1045_s17, 128, %s1050_s27, %s485_s28   ;;  %v480_v0 = vpop.f32.mrf.mxu0 }
 0x3e8   : > { %v645_v1 = vpop.f32.mrf.mxu0 }
 0x3e9 PF: > { %s510_s20 = sand.u32 1, %s824_s12   ;;  %p1111_p2 = scmp.ne.s32.totalorder %s1102_s25, 0 }
 0x3ea   : > { %p1112_p3 = scmp.ge.s32.totalorder %s836_s15, 2  ;;  %s511_s29 = scalar_lea.sflag [#allocation4], %s510_s20 }
 0x3ec   : > { %p665_p7 = pnand %p1112_p3, %p1111_p2 }
 0x3ee   : > { %p666_p8 = pneg %p665_p7 }
 0x3f0   : > { %819 = dma.done.wait (%p666_p8), %s511_s29, 128  }
 0x3f1   : > { %821 = vsyncadd (%p666_p8), %s511_s29, 4294967168  ;;  %p17_p13 = scmp.ge.s32.totalorder %s891_s18, 4   ;;  %s1113_s12 = smov %s828_s13 }
 0x3f2   : > { %s1114_s13 = smov %s832_s14  ;;  %s1115_s14 = smov %s903_s21 }
 0x3f3   : > { %s1116_s15 = smov %s891_s18  ;;  %19 = sbr.rel (!%p17_p13) target bundleno = 6 (0x6), region = 81 }
 0x3f8   :  { %516 = vsyncpa [#allocation3], 1 }
 0x3f9   :  { %518 = vsyncpa [#allocation3 + $0x1], 1 }
 0x3fa   :  { %519 = vsyncpa [#allocation6], 1 }
 0x3fb   :  { %520 = vsyncpa [#allocation4], 1 }
 0x3fc   :  { %522 = vsyncpa [#allocation4 + $0x1], 1 }

</bundles_post_ra>
